<compile_context>
chip_gen: v6e
topology: v6e:2x2x1
jax: 0.10.0
libtpu: 0.0.40
codegen_flags: <defaults>
</compile_context>

<pallas_src>
import functools
import numpy as np
import jax
import jax.numpy as jnp
from jax.experimental import pallas as pl
from jax.experimental.pallas import tpu as pltpu


# ---------------------------------------------------------------------------
# Pallas kernel: fused copy(x) + bilinear resize + normalize + q_sample
# ---------------------------------------------------------------------------
def _preprocess_body(ac_ref, om_ref,          # SMEM (B,) per-batch q_sample coefficients
                     x_ref,                   # (TB, Cx, Hs, Ws)   noisy SR sample
                     low_ref,                 # (TB, C,  Hl, Wl)   low-res conditioning
                     noise_ref,               # (TB, C,  Hs, Ws)   aug. noise, or None
                     wh_ref,                  # (Hs, Hl) f32       row-resize matrix
                     wwt_ref,                 # (Wl, Ws)           col-resize matrix (pre-T,
                     out_ref,                 #                     in the streaming dtype)
                     *, TB, C, Cx):
    base = pl.program_id(0) * TB

    # ---- fused torch.cat: one slab store of the noisy SR sample (no dtype change) ----
    out_ref[:, :Cx] = x_ref[...]

    wh = wh_ref[...]      # (Hs, Hl) f32
    wwt = wwt_ref[...]    # (Wl, Ws) streaming dtype (bf16 feeds the MXU natively)

    # ---- resize + normalize + q_sample, statically unrolled (TB*C is small) ----
    for b in range(TB):
        a = ac_ref[base + b]                  # sqrt(alphas_cumprod[s_b]) (1.0 if no aug.)
        two_a = a + a
        if noise_ref is not None:
            bb = om_ref[base + b]             # sqrt(1 - alphas_cumprod[s_b])
        for c in range(C):
            # column resize on the MXU: (Hl, Wl) @ (Wl, Ws), f32 accumulation
            t = jnp.dot(low_ref[b, c], wwt, preferred_element_type=jnp.float32)
            # row resize: (Hs, Hl) @ (Hl, Ws)
            r = jnp.dot(wh, t, preferred_element_type=jnp.float32)
            # a * (2r - 1) + bb * noise  ==  2a*r - a + bb*noise  (minimal VPU tail)
            val = two_a * r - a
            if noise_ref is not None:
                val = val + bb * noise_ref[b, c].astype(jnp.float32)
            out_ref[b, Cx + c] = val.astype(out_ref.dtype)


def _kernel_with_noise(ac_ref, om_ref, x_ref, low_ref, noise_ref, wh_ref, wwt_ref,
                       out_ref, *, TB, C, Cx):
    _preprocess_body(ac_ref, om_ref, x_ref, low_ref, noise_ref, wh_ref, wwt_ref,
                     out_ref, TB=TB, C=C, Cx=Cx)


def _kernel_no_noise(ac_ref, om_ref, x_ref, low_ref, wh_ref, wwt_ref,
                     out_ref, *, TB, C, Cx):
    _preprocess_body(ac_ref, om_ref, x_ref, low_ref, None, wh_ref, wwt_ref,
                     out_ref, TB=TB, C=C, Cx=Cx)


# ---------------------------------------------------------------------------
# pallas_call wrapper
# ---------------------------------------------------------------------------
def _vmem_budgets():
    """(double-buffered block budget, vmem_limit_bytes) per TPU generation."""
    cap = None
    try:
        cap = getattr(pltpu.get_tpu_info(), "vmem_capacity_bytes", None)
    except Exception:
        cap = None
    if cap is None:
        cap = 64 * 2**20                       # conservative default (v7x per-TC)
    if cap >= 96 * 2**20:                      # v5e / v6e: 128 MiB physical VMEM
        return 28 * 2**20, 96 * 2**20
    return 14 * 2**20, 48 * 2**20              # v7x: 64 MiB per TC, keep headroom


def _pick_batch_tile(B, bytes_per_batch_item, budget, max_tile=8):
    """Largest divisor of B whose double-buffered block fits the budget, with >=2 steps."""
    if B >= 2:
        max_tile = min(max_tile, B // 2)       # guarantee >=2 grid steps: megacore + pipeline
    max_tile = max(max_tile, 1)
    best = 1
    for d in range(1, B + 1):
        if B % d != 0 or d > max_tile:
            continue
        if 2 * d * bytes_per_batch_item <= budget:
            best = d
    return best


def _fused_preprocess(x, low, noise, sqrt_ac, sqrt_omac, wh, ww_t):
    B, Cx, Hs, Ws = x.shape
    _, C, Hl, Wl = low.shape
    out_dtype = x.dtype                        # never upcast: output keeps x's dtype
    has_noise = noise is not None

    x_isz = np.dtype(x.dtype).itemsize
    lo_isz = np.dtype(low.dtype).itemsize
    bytes_per_item = ((Cx + C) * Hs * Ws * x_isz        # output block
                      + Cx * Hs * Ws * x_isz            # x block
                      + C * Hl * Wl * lo_isz)           # low-res block
    if has_noise:
        bytes_per_item += C * Hs * Ws * np.dtype(noise.dtype).itemsize

    budget, gen_limit = _vmem_budgets()
    TB = _pick_batch_tile(B, bytes_per_item, budget)
    grid = (B // TB,)

    weights_bytes = Hs * Hl * 4 + Wl * Ws * np.dtype(ww_t.dtype).itemsize
    vmem_limit = int(min(gen_limit,
                         max(32 * 2**20,
                             2 * TB * bytes_per_item + 4 * weights_bytes + (4 << 20))))

    in_specs = [
        pl.BlockSpec(memory_space=pltpu.MemorySpace.SMEM),           # sqrt_ac   (B,)
        pl.BlockSpec(memory_space=pltpu.MemorySpace.SMEM),           # sqrt_omac (B,)
        pl.BlockSpec((TB, Cx, Hs, Ws), lambda i: (i, 0, 0, 0)),      # x
        pl.BlockSpec((TB, C, Hl, Wl), lambda i: (i, 0, 0, 0)),       # low-res
    ]
    args = [sqrt_ac, sqrt_omac, x, low]
    if has_noise:
        in_specs.append(pl.BlockSpec((TB, C, Hs, Ws), lambda i: (i, 0, 0, 0)))  # noise
        args.append(noise)
        kernel = functools.partial(_kernel_with_noise, TB=TB, C=C, Cx=Cx)
    else:
        kernel = functools.partial(_kernel_no_noise, TB=TB, C=C, Cx=Cx)
    in_specs += [
        pl.BlockSpec((Hs, Hl), lambda i: (0, 0)),                    # wh   (f32)
        pl.BlockSpec((Wl, Ws), lambda i: (0, 0)),                    # ww_t (stream dtype)
    ]
    args += [wh, ww_t]

    return pl.pallas_call(
        kernel,
        out_shape=jax.ShapeDtypeStruct((B, Cx + C, Hs, Ws), out_dtype),
        grid=grid,
        in_specs=in_specs,
        out_specs=pl.BlockSpec((TB, Cx + C, Hs, Ws), lambda i: (i, 0, 0, 0)),
        compiler_params=pltpu.CompilerParams(
            dimension_semantics=("parallel",),
            vmem_limit_bytes=vmem_limit,
        ),
    )(*args)


# ---------------------------------------------------------------------------
# Host-side glue
# ---------------------------------------------------------------------------
def _bilinear_weights(out_size, in_size):
    """Interpolation matrix (out, in): half-pixel centers, align_corners=False."""
    # TODO(synk): matches torchvision antialias=True only for up-sampling; the
    # antialiased down-sampling filter is not reproduced here.
    scale = in_size / out_size
    dst = np.arange(out_size, dtype=np.float64)
    src = np.clip((dst + 0.5) * scale - 0.5, 0.0, in_size - 1)
    lo = np.floor(src).astype(np.int64)
    hi = np.minimum(lo + 1, in_size - 1)
    frac = src - lo
    w = np.zeros((out_size, in_size), dtype=np.float64)
    w[np.arange(out_size), lo] += 1.0 - frac
    w[np.arange(out_size), hi] += frac
    return jnp.asarray(w, jnp.float32)


def make_noise_scheduler(num_timesteps=1000):
    """Deterministic DDPM-style schedule (linear betas)."""
    betas = np.linspace(1e-4, 0.02, num_timesteps, dtype=np.float64)
    alphas_cumprod = np.cumprod(1.0 - betas)
    return dict(
        num_timesteps=num_timesteps,
        sqrt_alphas_cumprod=jnp.asarray(np.sqrt(alphas_cumprod), jnp.float32),
        sqrt_one_minus_alphas_cumprod=jnp.asarray(np.sqrt(1.0 - alphas_cumprod), jnp.float32),
    )


def input_preprocessor(x, context, noise_scheduler, noise,
                       low_resolution_spatial_size, super_resolution_spatial_size,
                       context_input_key="low_resolution_images",
                       apply_gaussian_conditioning_augmentation=True,
                       rng_key=None, stream_dtype=jnp.bfloat16):
    low_res = context[context_input_key]
    B, C, Hl, Wl = low_res.shape
    assert B == x.shape[0]
    assert Hl == low_resolution_spatial_size and Wl == low_resolution_spatial_size
    Hs = Ws = super_resolution_spatial_size
    assert x.shape[2] == Hs and x.shape[3] == Ws

    wh = _bilinear_weights(Hs, Hl)          # (Hs, Hl) f32, row resize
    ww_t = _bilinear_weights(Ws, Wl).T      # (Wl, Ws)     col resize, pre-transposed

    nT = int(noise_scheduler["num_timesteps"])
    if apply_gaussian_conditioning_augmentation:
        if "augmentation_level" in context:
            s = jnp.full((B,), int(round(nT * float(context["augmentation_level"]))),
                         jnp.int32)
        elif "augmentation_timestep" in context:
            s = context["augmentation_timestep"].astype(jnp.int32)
        else:
            # TODO(synk): PyTorch uses noise_scheduler.sample_random_times (stateful
            # device RNG); here sampling uses an explicit JAX key.
            key = rng_key if rng_key is not None else jax.random.PRNGKey(0)
            s = jax.random.randint(key, (B,), 0, nT, dtype=jnp.int32)
        s = jnp.clip(s, 0, nT - 1)          # augmentation_level == 1.0 would index OOB
        context["augmentation_timestep"] = s
        sqrt_ac = noise_scheduler["sqrt_alphas_cumprod"][s].astype(jnp.float32)
        sqrt_omac = noise_scheduler["sqrt_one_minus_alphas_cumprod"][s].astype(jnp.float32)
        # TODO(synk): if noise is None while augmentation is on, PyTorch's q_sample
        # would sample fresh Gaussian noise internally; here the noise term is dropped
        # (callers must pass `noise` explicitly to get stochastic augmentation).
    else:
        sqrt_ac = jnp.ones((B,), jnp.float32)
        sqrt_omac = jnp.zeros((B,), jnp.float32)
        noise = None                        # q_sample skipped -> never stream noise

    # Bandwidth: stream the conditioning inputs (low-res / noise) in bf16 by default;
    # matmuls accumulate in f32.  Pass stream_dtype=jnp.float32 (or None to keep input
    # dtypes) for the exact path.  x / out are never up- or down-cast here.
    if stream_dtype is not None:
        sd = jnp.dtype(stream_dtype)
        low_in = low_res.astype(sd)
        noise_in = None if noise is None else noise.astype(sd)
    else:
        low_in = low_res
        noise_in = noise
    ww_t = ww_t.astype(low_in.dtype)        # feed the MXU in the streaming dtype

    return _fused_preprocess(x, low_in, noise_in, sqrt_ac, sqrt_omac, wh, ww_t)


# ---------------------------------------------------------------------------
# Example run
# ---------------------------------------------------------------------------
if __name__ == "__main__":
    B, C, Cx = 2, 3, 3
    LOW, SUP = 8, 16

    key = jax.random.PRNGKey(0)
    k1, k2, k3 = jax.random.split(key, 3)
    x = jax.random.normal(k1, (B, Cx, SUP, SUP), jnp.float32)                 # noisy SR sample
    # Low-res pixels on a 1/256 grid and bf16-exact noise so both the f32 and the
    # default bf16 streaming paths are exactly comparable to a float64 reference.
    low_res_images = jnp.floor(
        jax.random.uniform(k2, (B, C, LOW, LOW), jnp.float32) * 256.0) / 256.0
    noise = jax.random.normal(k3, (B, C, SUP, SUP), jnp.float32)
    noise = noise.astype(jnp.bfloat16).astype(jnp.float32)

    sched = make_noise_scheduler(1000)
    context = {"low_resolution_images": low_res_images, "augmentation_level": 0.25}

    # Exact f32 streaming path.
    out_f32 = input_preprocessor(x, context, sched, noise,
                                 low_resolution_spatial_size=LOW,
                                 super_resolution_spatial_size=SUP,
                                 stream_dtype=jnp.float32)
    # Default bf16 streaming path.
    out_bf16 = input_preprocessor(x, context, sched, noise,
                                  low_resolution_spatial_size=LOW,
                                  super_resolution_spatial_size=SUP)
    # No-noise variant (noise stream dropped from the kernel entirely).
    ctx2 = {"low_resolution_images": low_res_images, "augmentation_level": 0.25}
    out_nonoise = input_preprocessor(x, ctx2, sched, None,
                                     low_resolution_spatial_size=LOW,
                                     super_resolution_spatial_size=SUP,
                                     stream_dtype=jnp.float32)
    out_f32, out_bf16, out_nonoise = jax.block_until_ready((out_f32, out_bf16, out_nonoise))

    assert out_f32.shape == (B, Cx + C, SUP, SUP), out_f32.shape
    assert out_f32.dtype == x.dtype

    # Pure-numpy float64 reference of the same math (augmentation_level path).
    w64 = np.asarray(_bilinear_weights(SUP, LOW), np.float64)
    s = np.asarray(context["augmentation_timestep"])
    a = np.asarray(sched["sqrt_alphas_cumprod"], np.float64)[s][:, None, None, None]
    b = np.asarray(sched["sqrt_one_minus_alphas_cumprod"], np.float64)[s][:, None, None, None]
    low64 = np.asarray(low_res_images, np.float64)
    resized = np.einsum("Hh,bchw,Ww->bcHW", w64, low64, w64)
    cond = a * (resized * 2.0 - 1.0)
    x64 = np.asarray(x, np.float64)
    n64 = np.asarray(noise, np.float64)
    ref = np.concatenate([x64, cond + b * n64], axis=1)
    ref_nonoise = np.concatenate([x64, cond], axis=1)

    # Passthrough half must be a bit-exact copy of x.
    assert np.array_equal(np.asarray(out_f32)[:, :Cx], np.asarray(x)), "passthrough mismatch"
    assert np.allclose(np.asarray(out_f32), ref, atol=1e-4), "f32 path mismatch"
    assert np.allclose(np.asarray(out_bf16), ref, atol=1e-4), "bf16 path mismatch"
    assert np.allclose(np.asarray(out_nonoise), ref_nonoise, atol=1e-4), "no-noise path mismatch"

    print("KERNEL_OK")
</pallas_src>

<mosaic_0001>
module attributes {stable_mosaic.version = 11 : i64} {
  func.func @_kernel_with_noise(%arg0: i32, %arg1: memref<2xf32, #tpu.memory_space<smem>>, %arg2: memref<2xf32, #tpu.memory_space<smem>>, %arg3: memref<1x3x16x16xf32, #tpu.memory_space<vmem>>, %arg4: memref<1x3x8x8xf32, #tpu.memory_space<vmem>>, %arg5: memref<1x3x16x16xf32, #tpu.memory_space<vmem>>, %arg6: memref<16x8xf32, #tpu.memory_space<vmem>>, %arg7: memref<8x16xf32, #tpu.memory_space<vmem>>, %arg8: memref<1x6x16x16xf32, #tpu.memory_space<vmem>>) attributes {dimension_semantics = [#tpu.dimension_semantics<parallel>], iteration_bounds = array<i64: 2>, scalar_prefetch = 0 : i64, scratch_operands = 0 : i64, tpu.core_type = #tpu.core_type<tc>, window_params = [{transform_indices = @transform_0, window_bounds = array<i64: 2>}, {transform_indices = @transform_1, window_bounds = array<i64: 2>}, {transform_indices = @transform_2, window_bounds = array<i64: 1, 3, 16, 16>}, {transform_indices = @transform_3, window_bounds = array<i64: 1, 3, 8, 8>}, {transform_indices = @transform_4, window_bounds = array<i64: 1, 3, 16, 16>}, {pipeline_mode = #tpu.pipeline_mode<synchronous>, transform_indices = @transform_5, window_bounds = array<i64: 16, 8>}, {pipeline_mode = #tpu.pipeline_mode<synchronous>, transform_indices = @transform_6, window_bounds = array<i64: 8, 16>}, {transform_indices = @transform_7, window_bounds = array<i64: 1, 6, 16, 16>}]} {
    %c1_i32 = arith.constant 1 : i32
    %0 = arith.muli %arg0, %c1_i32 : i32
    %c0 = arith.constant 0 : index
    %c0_0 = arith.constant 0 : index
    %c0_1 = arith.constant 0 : index
    %c0_2 = arith.constant 0 : index
    %1 = vector.load %arg3[%c0, %c0_0, %c0_1, %c0_2] : memref<1x3x16x16xf32, #tpu.memory_space<vmem>>, vector<1x3x16x16xf32>
    %c0_3 = arith.constant 0 : index
    %c0_4 = arith.constant 0 : index
    %c0_5 = arith.constant 0 : index
    %c0_6 = arith.constant 0 : index
    %2 = vector.load %arg8[%c0_3, %c0_4, %c0_5, %c0_6] : memref<1x6x16x16xf32, #tpu.memory_space<vmem>>, vector<1x3x16x16xf32>
    tpu.vector_store %arg8[%c0_3, %c0_4, %c0_5, %c0_6], %1 {strides = array<i32>} : memref<1x6x16x16xf32, #tpu.memory_space<vmem>>, vector<1x3x16x16xf32>,
    %c0_7 = arith.constant 0 : index
    %c0_8 = arith.constant 0 : index
    %3 = vector.load %arg6[%c0_7, %c0_8] : memref<16x8xf32, #tpu.memory_space<vmem>>, vector<16x8xf32>
    %c0_9 = arith.constant 0 : index
    %c0_10 = arith.constant 0 : index
    %4 = vector.load %arg7[%c0_9, %c0_10] : memref<8x16xf32, #tpu.memory_space<vmem>>, vector<8x16xf32>
    %c0_i32 = arith.constant 0 : i32
    %5 = arith.addi %0, %c0_i32 : i32
    %6 = arith.index_cast %5 : i32 to index
    %7 = memref.load %arg1[%6] : memref<2xf32, #tpu.memory_space<smem>>
    %8 = arith.addf %7, %7 : f32
    %c0_i32_11 = arith.constant 0 : i32
    %9 = arith.addi %0, %c0_i32_11 : i32
    %10 = arith.index_cast %9 : i32 to index
    %11 = memref.load %arg2[%10] : memref<2xf32, #tpu.memory_space<smem>>
    %c0_12 = arith.constant 0 : index
    %c0_13 = arith.constant 0 : index
    %c0_14 = arith.constant 0 : index
    %c0_15 = arith.constant 0 : index
    %12 = vector.load %arg4[%c0_12, %c0_13, %c0_14, %c0_15] : memref<1x3x8x8xf32, #tpu.memory_space<vmem>>, vector<1x1x8x8xf32>
    %13 = vector.shape_cast %12 : vector<1x1x8x8xf32> to vector<8x8xf32>
    %cst = arith.constant dense<0.000000e+00> : vector<8x16xf32>
    %14 = tpu.matmul %13, %4, %cst {dimension_numbers = #tpu.dot_dimension_numbers<[1], [0], [0], [1], [0, 0, 1, 1], [], []>} : vector<8x8xf32>, vector<8x16xf32>, vector<8x16xf32> -> vector<8x16xf32>
    %cst_16 = arith.constant dense<0.000000e+00> : vector<16x16xf32>
    %15 = tpu.matmul %3, %14, %cst_16 {dimension_numbers = #tpu.dot_dimension_numbers<[1], [0], [0], [1], [0, 0, 1, 1], [], []>} : vector<16x8xf32>, vector<8x16xf32>, vector<16x16xf32> -> vector<16x16xf32>
    %16 = vector.broadcast %8 : f32 to vector<16x16xf32>
    %17 = arith.mulf %16, %15 : vector<16x16xf32>
    %18 = vector.broadcast %7 : f32 to vector<16x16xf32>
    %19 = arith.subf %17, %18 : vector<16x16xf32>
    %c0_17 = arith.constant 0 : index
    %c0_18 = arith.constant 0 : index
    %c0_19 = arith.constant 0 : index
    %c0_20 = arith.constant 0 : index
    %20 = vector.load %arg5[%c0_17, %c0_18, %c0_19, %c0_20] : memref<1x3x16x16xf32, #tpu.memory_space<vmem>>, vector<1x1x16x16xf32>
    %21 = vector.shape_cast %20 : vector<1x1x16x16xf32> to vector<16x16xf32>
    %22 = vector.broadcast %11 : f32 to vector<16x16xf32>
    %23 = arith.mulf %22, %21 : vector<16x16xf32>
    %24 = arith.addf %19, %23 : vector<16x16xf32>
    %c0_21 = arith.constant 0 : index
    %c3 = arith.constant 3 : index
    %c0_22 = arith.constant 0 : index
    %c0_23 = arith.constant 0 : index
    %25 = vector.load %arg8[%c0_21, %c3, %c0_22, %c0_23] : memref<1x6x16x16xf32, #tpu.memory_space<vmem>>, vector<1x1x16x16xf32>
    %26 = vector.shape_cast %25 : vector<1x1x16x16xf32> to vector<16x16xf32>
    %27 = vector.shape_cast %24 : vector<16x16xf32> to vector<1x1x16x16xf32>
    tpu.vector_store %arg8[%c0_21, %c3, %c0_22, %c0_23], %27 {strides = array<i32>} : memref<1x6x16x16xf32, #tpu.memory_space<vmem>>, vector<1x1x16x16xf32>,
    %c0_24 = arith.constant 0 : index
    %c1 = arith.constant 1 : index
    %c0_25 = arith.constant 0 : index
    %c0_26 = arith.constant 0 : index
    %28 = vector.load %arg4[%c0_24, %c1, %c0_25, %c0_26] : memref<1x3x8x8xf32, #tpu.memory_space<vmem>>, vector<1x1x8x8xf32>
    %29 = vector.shape_cast %28 : vector<1x1x8x8xf32> to vector<8x8xf32>
    %cst_27 = arith.constant dense<0.000000e+00> : vector<8x16xf32>
    %30 = tpu.matmul %29, %4, %cst_27 {dimension_numbers = #tpu.dot_dimension_numbers<[1], [0], [0], [1], [0, 0, 1, 1], [], []>} : vector<8x8xf32>, vector<8x16xf32>, vector<8x16xf32> -> vector<8x16xf32>
    %cst_28 = arith.constant dense<0.000000e+00> : vector<16x16xf32>
    %31 = tpu.matmul %3, %30, %cst_28 {dimension_numbers = #tpu.dot_dimension_numbers<[1], [0], [0], [1], [0, 0, 1, 1], [], []>} : vector<16x8xf32>, vector<8x16xf32>, vector<16x16xf32> -> vector<16x16xf32>
    %32 = vector.broadcast %8 : f32 to vector<16x16xf32>
    %33 = arith.mulf %32, %31 : vector<16x16xf32>
    %34 = vector.broadcast %7 : f32 to vector<16x16xf32>
    %35 = arith.subf %33, %34 : vector<16x16xf32>
    %c0_29 = arith.constant 0 : index
    %c1_30 = arith.constant 1 : index
    %c0_31 = arith.constant 0 : index
    %c0_32 = arith.constant 0 : index
    %36 = vector.load %arg5[%c0_29, %c1_30, %c0_31, %c0_32] : memref<1x3x16x16xf32, #tpu.memory_space<vmem>>, vector<1x1x16x16xf32>
    %37 = vector.shape_cast %36 : vector<1x1x16x16xf32> to vector<16x16xf32>
    %38 = vector.broadcast %11 : f32 to vector<16x16xf32>
    %39 = arith.mulf %38, %37 : vector<16x16xf32>
    %40 = arith.addf %35, %39 : vector<16x16xf32>
    %c0_33 = arith.constant 0 : index
    %c4 = arith.constant 4 : index
    %c0_34 = arith.constant 0 : index
    %c0_35 = arith.constant 0 : index
    %41 = vector.load %arg8[%c0_33, %c4, %c0_34, %c0_35] : memref<1x6x16x16xf32, #tpu.memory_space<vmem>>, vector<1x1x16x16xf32>
    %42 = vector.shape_cast %41 : vector<1x1x16x16xf32> to vector<16x16xf32>
    %43 = vector.shape_cast %40 : vector<16x16xf32> to vector<1x1x16x16xf32>
    tpu.vector_store %arg8[%c0_33, %c4, %c0_34, %c0_35], %43 {strides = array<i32>} : memref<1x6x16x16xf32, #tpu.memory_space<vmem>>, vector<1x1x16x16xf32>,
    %c0_36 = arith.constant 0 : index
    %c2 = arith.constant 2 : index
    %c0_37 = arith.constant 0 : index
    %c0_38 = arith.constant 0 : index
    %44 = vector.load %arg4[%c0_36, %c2, %c0_37, %c0_38] : memref<1x3x8x8xf32, #tpu.memory_space<vmem>>, vector<1x1x8x8xf32>
    %45 = vector.shape_cast %44 : vector<1x1x8x8xf32> to vector<8x8xf32>
    %cst_39 = arith.constant dense<0.000000e+00> : vector<8x16xf32>
    %46 = tpu.matmul %45, %4, %cst_39 {dimension_numbers = #tpu.dot_dimension_numbers<[1], [0], [0], [1], [0, 0, 1, 1], [], []>} : vector<8x8xf32>, vector<8x16xf32>, vector<8x16xf32> -> vector<8x16xf32>
    %cst_40 = arith.constant dense<0.000000e+00> : vector<16x16xf32>
    %47 = tpu.matmul %3, %46, %cst_40 {dimension_numbers = #tpu.dot_dimension_numbers<[1], [0], [0], [1], [0, 0, 1, 1], [], []>} : vector<16x8xf32>, vector<8x16xf32>, vector<16x16xf32> -> vector<16x16xf32>
    %48 = vector.broadcast %8 : f32 to vector<16x16xf32>
    %49 = arith.mulf %48, %47 : vector<16x16xf32>
    %50 = vector.broadcast %7 : f32 to vector<16x16xf32>
    %51 = arith.subf %49, %50 : vector<16x16xf32>
    %c0_41 = arith.constant 0 : index
    %c2_42 = arith.constant 2 : index
    %c0_43 = arith.constant 0 : index
    %c0_44 = arith.constant 0 : index
    %52 = vector.load %arg5[%c0_41, %c2_42, %c0_43, %c0_44] : memref<1x3x16x16xf32, #tpu.memory_space<vmem>>, vector<1x1x16x16xf32>
    %53 = vector.shape_cast %52 : vector<1x1x16x16xf32> to vector<16x16xf32>
    %54 = vector.broadcast %11 : f32 to vector<16x16xf32>
    %55 = arith.mulf %54, %53 : vector<16x16xf32>
    %56 = arith.addf %51, %55 : vector<16x16xf32>
    %c0_45 = arith.constant 0 : index
    %c5 = arith.constant 5 : index
    %c0_46 = arith.constant 0 : index
    %c0_47 = arith.constant 0 : index
    %57 = vector.load %arg8[%c0_45, %c5, %c0_46, %c0_47] : memref<1x6x16x16xf32, #tpu.memory_space<vmem>>, vector<1x1x16x16xf32>
    %58 = vector.shape_cast %57 : vector<1x1x16x16xf32> to vector<16x16xf32>
    %59 = vector.shape_cast %56 : vector<16x16xf32> to vector<1x1x16x16xf32>
    tpu.vector_store %arg8[%c0_45, %c5, %c0_46, %c0_47], %59 {strides = array<i32>} : memref<1x6x16x16xf32, #tpu.memory_space<vmem>>, vector<1x1x16x16xf32>,
    return
  }
  func.func @transform_0(%arg0: i32) -> i32 {
    %c0_i32 = arith.constant 0 : i32
    %c0_i32_0 = arith.constant 0 : i32
    return %c0_i32 : i32
  }
  func.func @transform_1(%arg0: i32) -> i32 {
    %c0_i32 = arith.constant 0 : i32
    %c0_i32_0 = arith.constant 0 : i32
    return %c0_i32 : i32
  }
  func.func @transform_2(%arg0: i32) -> (i32, i32, i32, i32) {
    %c0_i32 = arith.constant 0 : i32
    %c0_i32_0 = arith.constant 0 : i32
    %c0_i32_1 = arith.constant 0 : i32
    %c0_i32_2 = arith.constant 0 : i32
    return %arg0, %c0_i32, %c0_i32_0, %c0_i32_1 : i32, i32, i32, i32
  }
  func.func @transform_3(%arg0: i32) -> (i32, i32, i32, i32) {
    %c0_i32 = arith.constant 0 : i32
    %c0_i32_0 = arith.constant 0 : i32
    %c0_i32_1 = arith.constant 0 : i32
    %c0_i32_2 = arith.constant 0 : i32
    return %arg0, %c0_i32, %c0_i32_0, %c0_i32_1 : i32, i32, i32, i32
  }
  func.func @transform_4(%arg0: i32) -> (i32, i32, i32, i32) {
    %c0_i32 = arith.constant 0 : i32
    %c0_i32_0 = arith.constant 0 : i32
    %c0_i32_1 = arith.constant 0 : i32
    %c0_i32_2 = arith.constant 0 : i32
    return %arg0, %c0_i32, %c0_i32_0, %c0_i32_1 : i32, i32, i32, i32
  }
  func.func @transform_5(%arg0: i32) -> (i32, i32) {
    %c0_i32 = arith.constant 0 : i32
    %c0_i32_0 = arith.constant 0 : i32
    %c0_i32_1 = arith.constant 0 : i32
    return %c0_i32, %c0_i32_0 : i32, i32
  }
  func.func @transform_6(%arg0: i32) -> (i32, i32) {
    %c0_i32 = arith.constant 0 : i32
    %c0_i32_0 = arith.constant 0 : i32
    %c0_i32_1 = arith.constant 0 : i32
    return %c0_i32, %c0_i32_0 : i32, i32
  }
  func.func @transform_7(%arg0: i32) -> (i32, i32, i32, i32) {
    %c0_i32 = arith.constant 0 : i32
    %c0_i32_0 = arith.constant 0 : i32
    %c0_i32_1 = arith.constant 0 : i32
    %c0_i32_2 = arith.constant 0 : i32
    return %arg0, %c0_i32, %c0_i32_0, %c0_i32_1 : i32, i32, i32, i32
  }
}

</mosaic_0001>

<bundles_post_ra>
// kernel: tpu_custom_call.1
= control target key start
LH: loop header
LB: loop body
LE: loop exit
PB: predicated region body
PF: predicated region fallthrough
CT: control target
= control target key end

     0   :  { %s1831_s0 = inlined_call_operand.vmem [shape: f32[2], index: 0, kind: input, shape index: {}]   ;;  %s1832_s1 = inlined_call_operand.vmem [shape: f32[2], index: 1, kind: input, shape index: {}]   ;;  %s1833_s2 = inlined_call_operand.hbm [shape: f32[2,3,16,16], index: 2, kind: input, shape index: {}]   ;;  %s1834_s3 = inlined_call_operand.hbm [shape: f32[2,3,8,8], index: 3, kind: input, shape index: {}]   ;;  %s1835_s4 = inlined_call_operand.hbm [shape: f32[2,3,16,16], index: 4, kind: input, shape index: {}]   ;;  %s1836_s5 = inlined_call_operand.vmem [shape: f32[16,8], index: 5, kind: input, shape index: {}]   ;;  %s1837_s6 = inlined_call_operand.vmem [shape: f32[8,16], index: 6, kind: input, shape index: {}]   ;;  %s1838_s7 = inlined_call_operand.hbm [shape: f32[2,6,16,16], index: 7, kind: output, shape index: {}]  }
   0x1   :  { %1855 = sst [smem:[#allocation21_spill]] %s1831_s0 }
   0x2   :  { %1856 = sst [smem:[#allocation22_spill]] %s1832_s1 }
   0x3   :  { %1857 = sst [smem:[#allocation23_spill]] %s1834_s3 }
   0x4   :  { %12 = vsyncpa [#allocation5], 0 }
   0x5   :  { %13 = vsyncpa [#allocation7], 0 }
   0x6   :  { %14 = vsyncpa [#allocation3], 0 }
   0x7   :  { %16 = vsyncpa [#allocation3 + $0x1], 0 }
   0x8   :  { %17 = vsyncpa [#allocation10], 0 }
   0x9   :  { %19 = vsyncpa [#allocation10 + $0x1], 0 }
   0xa   :  { %20 = vsyncpa [#allocation4], 0 }
   0xb   :  { %22 = vsyncpa [#allocation4 + $0x1], 0  ;;  %s1489_s24 = smov 0   ;;  %s1491_s25 = smov 0  }
   0xc   :  { %s1493_s26 = smov 0   ;;  %s1495_s27 = smov 0  }
   0xd LB: > { %1858 = sst [smem:[#allocation18_spill]] %s1431_s26  ;;  %s1510_s28 = sadd.s32 1, %s1435_s27   ;;  %s1435_s27 = sphi %s1495_s27, %s1885_s27   ;;  %s1431_s26 = sphi %s1493_s26, %s1887_s26   ;;  %s1427_s25 = sphi %s1491_s25, %s1889_s25   ;;  %s1423_s24 = sphi %s1489_s24, %s1888_s24  }
   0xe   : > { %1859 = sst [smem:[#allocation19_spill]] %s1510_s28  ;;  %s77_s29 = sadd.s32 1, %s1431_s26 }
   0xf   : > { %s74_s30 = ssub.s32 %s1435_s27, %s1510_s28  ;;  %p1839_p0 = scmp.ne.s32.totalorder %s1431_s26, %s1427_s25 }
  0x10   : > { %p75_p1 = scmp.eq.s32.totalorder %s74_s30, 0  ;;  %p85_p2 = scmp.eq.s32.totalorder %s1435_s27, 0 }
  0x11   : > { %p1201_p4 = scmp.lt.s32.totalorder %s1435_s27, 2  ;;  %s1527_s9 = sand.u32 1, %s1431_s26  }
  0x12   : > { %s1521_s8 = scalar_select %p75_p1, %s1431_s26, %s77_s29  }
  0x13   : > { %p86_p5 = por %p85_p2, %p1839_p0  ;;  %s283_s11 = sand.u32 1, %s1435_s27  }
  0x14   : > { %1860 = sst [smem:[#allocation20_spill]] %s1521_s8  ;;  %s1154_s12 = smul.u32 24, %s1527_s9 }
  0x15   : > { %p1529_p6 = pnand %p1201_p4, %p86_p5  ;;  %s1155_s13 = smul.u32 384, %s1435_s27 }
  0x16   : > { %s1862_s3 = sld [smem:[#allocation23_spill]]  ;;  %s287_s17 = scalar_lea.vmem [#allocation9], %s1154_s12 }
  0x17   : > { %s1861_s10 = scalar_select %p1529_p6, 1, 0 }
  0x18   : > { %s294_s18 = sshll.u32 %s287_s17, 4  ;;  %s1543_s19 = scalar_lea.sflag [#allocation10], %s283_s11  ;;  %s1541_s18 = int_to_ptr.vmem [resolvable:$true] %s294_s18 }
  0x19   : > { %p1549_p8 = pneg %p1529_p6 }
  0x1b   : > { %s1863_s21 = scalar_select %p1549_p8, 1, 0 }
  0x1c   : > { %s1539_s16 = scalar_lea.hbm %s1862_s3, %s1155_s13  ;;  %s1250_s29 = scalar_lea.hbm %s1862_s3, 768 }
  0x1d   : > { %s1245_s20 = scalar_lea.hbm %s1539_s16, 384  ;;  %p1251_p11 = scmp.lt.s32.totalorder %s1539_s16, %s1862_s3 }
  0x1e   : > { %p1246_p7 = scmp.ne.s32.totalorder %s1539_s16, %s1245_s20  ;;  %p1252_p12 = scmp.lt.s32.totalorder %s1250_s29, %s1245_s20 }
  0x20   : > { %p1248_p9 = pnand %p1549_p8, %p1246_p7  ;;  %p1253_p13 = por %p1252_p12, %p1251_p11 }
  0x22   : > { %p1249_p10 = pneg %p1248_p9 }
  0x24   : > { %p1254_p1 = pnand %p1253_p13, %p1249_p10 }
  0x26   : > { %1257 = shalt.err (!%p1254_p1)
}
  0x27   : > { %s1258_s11 = scalar_lea.vmem %s1541_s18, 384  ;;  %s1437_s13 = smov [#allocation9]  }
  0x28   : > { %p1259_p2 = scmp.ne.s32.totalorder %s1541_s18, %s1258_s11  ;;  %s1263_s14 = sshll.u32 %s1437_s13, 4  ;;  %s1264_s14 = int_to_ptr.vmem [resolvable:$false] %s1263_s14 }
  0x29   : > { %s1265_s15 = scalar_lea.vmem %s1264_s14, 768  ;;  %p1266_p7 = scmp.lt.s32.totalorder %s1541_s18, %s1264_s14 }
  0x2a   : > { %p1261_p4 = pnand %p1259_p2, %p1549_p8  ;;  %p1267_p9 = scmp.lt.s32.totalorder %s1265_s15, %s1258_s11 }
  0x2c   : > { %p1262_p5 = pneg %p1261_p4  ;;  %p1268_p3 = por %p1267_p9, %p1266_p7 }
  0x2e   : > { %p1269_p0 = pnand %p1268_p3, %p1262_p5 }
  0x30   : > { %1272 = shalt.err (!%p1269_p0)
}
  0x31   : > { %s1840_s17 = smov 128   ;;  %s1842_s20 = smov 8  }
  0x32   : > { %1191 = dma.hbm_to_vmem [thread:$0]  (!%p1529_p6), %s1539_s16, 384, %s1541_s18, %s1543_s19, %s1840_s17, %s1840_s17, %s1842_s20  }
  0x33   : > { %s1576_s22 = sadd.s32 4294967295, %s1435_s27   ;;  %s1072_s23 = sadd.s32 4294967294, %s1435_s27  }
  0x34   : > { %p90_p0 = scmp.ne.s32.totalorder %s1427_s25, %s1423_s24  ;;  %p1845_p3 = scmp.eq.s32.totalorder %s1576_s22, 0 }
  0x35   : > { %p208_p10 = scmp.eq.s32.totalorder %s1576_s22, 1  ;;  %p214_p11 = scmp.eq.s32.totalorder %s1072_s23, 1 }
  0x36   : > { %p1585_p12 = por %p1845_p3, %p90_p0  ;;  %p1073_p13 = scmp.ge.s32.totalorder %s1435_s27, 1 }
  0x37   : > { %p1865_p1 = scmp.ne.s32.totalorder %s1431_s26, %s1427_s25  ;;  %p1597_p4 = por %p214_p11, %p90_p0 }
  0x38   : > { %s1864_s29 = scalar_select %p1585_p12, 1, 0 }
  0x39   : > { %p1593_p2 = por %p208_p10, %p1865_p1  ;;  %p221_p5 = scmp.lt.s32.totalorder %s1435_s27, 3 }
  0x3a   : > { %s1867_s18 = scalar_select %p1597_p4, 1, 0 }
  0x3b   : > { %s1866_s16 = scalar_select %p1593_p2, 1, 0 }
  0x3c   : > { %s1868_s0 = sld [smem:[#allocation21_spill]]  ;;  %p1605_p7 = pnand %p1073_p13, %p221_p5 }
  0x3d   : > { %s1870_s1 = sld [smem:[#allocation22_spill]]  ;;  %s1152_s17 = smul.u32 48, %s1527_s9 }
  0x3e   : > { %s1869_s13 = scalar_select %p1605_p7, 1, 0 }
  0x3f   : > { %p1178_p9 = pneg %p1605_p7  ;;  %s1153_s30 = smul.u32 768, %s1435_s27 }
  0x41   : > { %p1617_p0 = pnand %p1178_p9, %p1845_p3  ;;  %s1625_s3 = scalar_lea.hbm %s1833_s2, %s1153_s30 }
  0x42   : > { %s234_s11 = sshll.u32 %s1868_s0, 4  ;;  %s235_s11 = int_to_ptr.vmem [resolvable:$true] %s234_s11 }
  0x43   : > { %s245_s23 = sshll.u32 %s1870_s1, 4  ;;  %s1273_s8 = scalar_lea.vmem %s235_s11, 16  ;;  %s246_s23 = int_to_ptr.vmem [resolvable:$true] %s245_s23 }
  0x44   : > { %p1274_p10 = scmp.ne.s32.totalorder %s235_s11, %s1273_s8  ;;  %p1275_p11 = pneg %p1617_p0 }
  0x45   : > { %p1281_p5 = scmp.lt.s32.totalorder %s235_s11, %s235_s11  ;;  %p1282_p4 = scmp.lt.s32.totalorder %s1273_s8, %s1273_s8 }
  0x46   : > { %p1276_p13 = pnand %p1275_p11, %p1274_p10 }
  0x47   : > { %p1283_p2 = por %p1282_p4, %p1281_p5 }
  0x48   : > { %p1277_p1 = pneg %p1276_p13 }
  0x4a   : > { %p1284_p9 = pnand %p1283_p2, %p1277_p1 }
  0x4c   : > { %1287 = shalt.err (!%p1284_p9)
}
  0x4d   : > { %s1440_s14 = smov [#allocation2]   ;;  %s1288_s15 = scalar_lea.vmem %s246_s23, 16 }
  0x4e   : > { %1181 = dma.vmem_to_smem (!%p1617_p0), %s235_s11, 16, %s1440_s14, [#allocation5]  }
  0x4f   : > { %p1289_p3 = scmp.ne.s32.totalorder %s246_s23, %s1288_s15  ;;  %p1296_p6 = scmp.lt.s32.totalorder %s246_s23, %s246_s23 }
  0x50   : > { %p1297_p8 = scmp.lt.s32.totalorder %s1288_s15, %s1288_s15 }
  0x51   : > { %p1291_p12 = pnand %p1289_p3, %p1275_p11 }
  0x52   : > { %p1298_p10 = por %p1297_p8, %p1296_p6 }
  0x53   : > { %p1292_p7 = pneg %p1291_p12 }
  0x55   : > { %p1299_p13 = pnand %p1298_p10, %p1292_p7 }
  0x57   : > { %1302 = shalt.err (!%p1299_p13)
}
  0x58   : > { %s1441_s0 = smov [#allocation6]   ;;  %s266_s8 = scalar_lea.vmem [#allocation8], %s1152_s17 }
  0x59   : > { %1184 = dma.vmem_to_smem (!%p1617_p0), %s246_s23, 16, %s1441_s0, [#allocation7]  }
  0x5a   : > { %s273_s11 = sshll.u32 %s266_s8, 4  ;;  %s1638_s15 = scalar_lea.hbm %s1835_s4, %s1153_s30  ;;  %s1640_s11 = int_to_ptr.vmem [resolvable:$true] %s273_s11 }
  0x5b   : > { %s1644_s20 = scalar_lea.vmem [#allocation11], %s1152_s17  ;;  %s263_s26 = scalar_lea.sflag [#allocation3], %s1527_s9 }
  0x5c   : > { %s315_s1 = sshll.u32 %s1644_s20, 4  ;;  %s1303_s28 = scalar_lea.hbm %s1625_s3, 768  ;;  %s316_s1 = int_to_ptr.vmem [resolvable:$true] %s315_s1 }
  0x5d   : > { %p1304_p6 = scmp.ne.s32.totalorder %s1625_s3, %s1303_s28  ;;  %p1872_p8 = scmp.ne.s32.totalorder %s1863_s21, 0 }
  0x5e   : > { %s1308_s8 = scalar_lea.hbm %s1833_s2, 1536  ;;  %p1309_p2 = scmp.lt.s32.totalorder %s1625_s3, %s1833_s2 }
  0x5f   : > { %p1306_p3 = pnand %p1304_p6, %p1872_p8  ;;  %p1310_p4 = scmp.lt.s32.totalorder %s1308_s8, %s1303_s28 }
  0x61   : > { %p1307_p12 = pneg %p1306_p3  ;;  %p1311_p7 = por %p1310_p4, %p1309_p2 }
  0x63   : > { %p1312_p0 = pnand %p1311_p7, %p1307_p12 }
  0x65   : > { %1315 = shalt.err (!%p1312_p0)
}
  0x66   : > { %s1316_s9 = scalar_lea.vmem %s1640_s11, 768  ;;  %s1442_s17 = smov [#allocation8]  }
  0x67   : > { %p1317_p11 = scmp.ne.s32.totalorder %s1640_s11, %s1316_s9  ;;  %s1321_s14 = sshll.u32 %s1442_s17, 4  ;;  %s1322_s14 = int_to_ptr.vmem [resolvable:$false] %s1321_s14 }
  0x68   : > { %s1323_s23 = scalar_lea.vmem %s1322_s14, 1536  ;;  %p1324_p9 = scmp.lt.s32.totalorder %s1640_s11, %s1322_s14 }
  0x69   : > { %p1319_p1 = pnand %p1317_p11, %p1872_p8  ;;  %p1325_p10 = scmp.lt.s32.totalorder %s1323_s23, %s1316_s9 }
  0x6b   : > { %p1320_p5 = pneg %p1319_p1  ;;  %p1326_p13 = por %p1325_p10, %p1324_p9 }
  0x6d   : > { %p1327_p6 = pnand %p1326_p13, %p1320_p5 }
  0x6f   : > { %1330 = shalt.err (!%p1327_p6)
}
  0x70   : > { %p1873_p3 = scmp.ne.s32.totalorder %s1861_s10, 0  ;;  %s1874_s28 = smov 8  }
  0x71   : > { %s1875_s0 = smov 128   ;;  %s1331_s8 = scalar_lea.hbm %s1638_s15, 768 }
  0x72   : > { %1188 = dma.hbm_to_vmem [thread:$0]  (!%p1873_p3), %s1625_s3, 768, %s1640_s11, %s263_s26, %s1875_s0, %s1875_s0, %s1874_s28  }
  0x73   : > { %p1332_p12 = scmp.ne.s32.totalorder %s1638_s15, %s1331_s8  ;;  %s1336_s9 = scalar_lea.hbm %s1835_s4, 1536 }
  0x74   : > { %p1337_p7 = scmp.lt.s32.totalorder %s1638_s15, %s1835_s4  ;;  %p1338_p0 = scmp.lt.s32.totalorder %s1336_s9, %s1331_s8 }
  0x75   : > { %p1334_p2 = pnand %p1332_p12, %p1872_p8 }
  0x76   : > { %p1339_p11 = por %p1338_p0, %p1337_p7 }
  0x77   : > { %p1335_p4 = pneg %p1334_p2 }
  0x79   : > { %p1340_p1 = pnand %p1339_p11, %p1335_p4 }
  0x7b   : > { %1343 = shalt.err (!%p1340_p1)
}
  0x7c   : > { %s1344_s3 = scalar_lea.vmem %s316_s1, 768  ;;  %s1443_s26 = smov [#allocation11]  }
  0x7d   : > { %p1345_p5 = scmp.ne.s32.totalorder %s316_s1, %s1344_s3  ;;  %s1349_s11 = sshll.u32 %s1443_s26, 4  ;;  %s1350_s11 = int_to_ptr.vmem [resolvable:$false] %s1349_s11 }
  0x7e   : > { %s1351_s20 = scalar_lea.vmem %s1350_s11, 1536  ;;  %p1352_p13 = scmp.lt.s32.totalorder %s316_s1, %s1350_s11 }
  0x7f   : > { %p1347_p9 = pnand %p1345_p5, %p1872_p8  ;;  %p1353_p6 = scmp.lt.s32.totalorder %s1351_s20, %s1344_s3 }
  0x81   : > { %p1348_p10 = pneg %p1347_p9  ;;  %p1354_p12 = por %p1353_p6, %p1352_p13 }
  0x83   : > { %p1355_p2 = pnand %p1354_p12, %p1348_p10 }
  0x85   : > { %1358 = shalt.err (!%p1355_p2)
}
  0x86   : > { %1194 = dma.hbm_to_vmem [thread:$0]  (!%p1873_p3), %s1638_s15, 768, %s316_s1, %s1543_s19, %s1875_s0, %s1875_s0, %s1874_s28  }
  0x87   : > { %p1876_p8 = scmp.ne.s32.totalorder %s1869_s13, 0 }
  0x88   : > { %p1877_p4 = scmp.eq.s32.totalorder (!%p1876_p8), %s1576_s22, 0 }
  0x89   : > { %327 = sbr.rel (%p1876_p8) target bundleno = 578 (0x242), region = 48 }
  0x8e   : > { %1402 = dma.done.wait (%p1877_p4), [#allocation5], 16   ;;  %p1878_p7 = pmov %p1877_p4 }
  0x8f   : > { %p1879_p0 = pmov %p1877_p4 }
  0x90   : > { %1404 = vsyncadd (%p1878_p7), [#allocation5], 4294967280 }
  0x91   : > { %1406 = dma.done.wait (%p1879_p0), [#allocation7], 16   ;;  %p1880_p11 = pmov %p1879_p0 }
  0x92   : > { %s1704_s10 = sand.u32 1, %s1427_s25   ;;  %p1881_p3 = scmp.ne.s32.totalorder %s1864_s29, 0 }
  0x93   : > { %1408 = vsyncadd (%p1880_p11), [#allocation7], 4294967280  ;;  %s1158_s1 = smul.u32 48, %s1704_s10  ;;  %s338_s19 = scalar_lea.sflag [#allocation3], %s1704_s10 }
  0x95   : > { %s1708_s21 = scalar_lea.vmem [#allocation8], %s1158_s1 }
  0x96   : > { %1410 = dma.done.wait (%p1881_p3), %s338_s19, 768  }
  0x97   : > { %1412 = vsyncadd (%p1881_p3), %s338_s19, 4294966528  ;;  %s346_s13 = sand.u32 1, %s1576_s22   ;;  %s1159_s15 = smul.u32 24, %s1704_s10 }
  0x98   : > { %s347_s23 = scalar_lea.sflag [#allocation10], %s346_s13 }
  0x99   : > { %s350_s28 = scalar_lea.vmem [#allocation9], %s1159_s15 }
  0x9a   : > { %1414 = dma.done.wait (%p1881_p3), %s347_s23, 1152  }
  0x9b   : > { %1416 = vsyncadd (%p1881_p3), %s347_s23, 4294966144  ;;  %s1720_s0 = scalar_lea.vmem [#allocation11], %s1158_s1 }
  0x9c   : > { %364 = sfence }
  0x9d   : > { %v416_v0 = vld [vmem:[%s1837_s6] sm:$0xff]  ;;  %vm421_vm0 = vcmask 64512   ;;  %v1444_v2 = vmov 0.0   ;;  %vm1445_vm1 = vmmov 0   ;;  %v1096_v4 = vld [vmem:[%s350_s28 + $0x10] sm:$0xff]  ;;  %s1160_s14 = smul.u32 96, %s1704_s10 }
  0x9e   : > { %v420_v1 = vld [vmem:[%s350_s28] sm:$0xff]  ;;  %1122 = vmatprep.subr.mxu0 %v1444_v2  ;;  %1124 = vmatprep.mubr.msk.f32.mxu0 %vm1445_vm1, %v1444_v2  ;;  %v1088_v3 = vld [vmem:[%s350_s28 + $0x8] sm:$0xff]  ;;  %vm407_vm2 = vcmask 130048   ;;  %v404_v16 = vld [vmem:[%s1708_s21 + $0x18] sm:$0xff]  ;;  %s417_s26 = sld [smem:[#allocation2 + %s1576_s22]]  ;;  %s1161_s1 = smul.u32 1536, %s1576_s22 }
  0x9f   : > { %1123 = vmatpush3.msra.mxu0 %v416_v0  ;;  %v414_v5 = vld [vmem:[%s1836_s5] sm:$0xff]  ;;  %v415_v7 = vld [vmem:[%s1836_s5 + $0x8] sm:$0xff]  ;;  %s1747_s3 = scalar_lea.vmem [#allocation12], %s1160_s14  ;;  %s419_s11 = sld [smem:[#allocation6 + %s1576_s22]] }
  0xa0   : > { %1125 = vmatmul.mubr.msk.f32.vlgmr.msra.gmra.mxu0 %vm421_vm0, %v420_v1  ;;  %1132 = vmatprep.subr.mxu0 %v1444_v2  ;;  %v401_v13 = vld [vmem:[%s1708_s21] sm:$0xff]  ;;  %v402_v14 = vld [vmem:[%s1708_s21 + $0x8] sm:$0xff]  ;;  %v403_v15 = vld [vmem:[%s1708_s21 + $0x10] sm:$0xff]  ;;  %411 = vst.msk [vmem:[%s1747_s3 + $0x18] sm:$0xff] %vm407_vm2, %v404_v16  ;;  %s934_s19 = sshll.u32 %s1747_s3, 4  ;;  %s1782_s15 = scalar_lea.hbm %s1838_s7, %s1161_s1  ;;  %s1784_s19 = int_to_ptr.vmem [resolvable:$true] %s934_s19 }
  0xa1   : > { %1133 = vmatpush3.msra.mxu0 %v416_v0  ;;  %1134 = vmatprep.mubr.msk.f32.mxu0 %vm1445_vm1, %v1444_v2  ;;  %v405_v17 = vld [vmem:[%s1708_s21 + $0x20] sm:$0xff]  ;;  %v406_v18 = vld [vmem:[%s1708_s21 + $0x28] sm:$0xff]  ;;  %408 = vst.msk [vmem:[%s1747_s3] sm:$0xff] %vm407_vm2, %v401_v13  ;;  %409 = vst.msk [vmem:[%s1747_s3 + $0x8] sm:$0xff] %vm407_vm2, %v402_v14  ;;  %s921_s22 = scalar_lea.sflag [#allocation4], %s1704_s10  ;;  %s1359_s23 = scalar_lea.vmem %s1784_s19, 1536 }
  0xa2   : > { %1142 = vmatprep.subr.mxu0 %v1444_v2  ;;  %1129 = vmatprep.mubr.msk.f32.mxu1 %vm421_vm0, %v414_v5  ;;  %410 = vst.msk [vmem:[%s1747_s3 + $0x10] sm:$0xff] %vm407_vm2, %v403_v15  ;;  %412 = vst.msk [vmem:[%s1747_s3 + $0x20] sm:$0xff] %vm407_vm2, %v405_v17  ;;  %v583_v20 = vld [vmem:[%s1720_s0 + $0x8] sm:$0xff]  ;;  %v582_v24 = vld [vmem:[%s1720_s0] sm:$0xff]  ;;  %p1360_p1 = scmp.ne.s32.totalorder %s1784_s19, %s1359_s23  ;;  %p1882_p5 = scmp.ne.s32.totalorder %s1866_s16, 0 }
  0xa3   : > { %413 = vst.msk [vmem:[%s1747_s3 + $0x28] sm:$0xff] %vm407_vm2, %v406_v18  ;;  %v1093_v28 = vld [vmem:[%s1720_s0 + $0x18] sm:$0xff]  ;;  %v1092_v33 = vld [vmem:[%s1720_s0 + $0x10] sm:$0xff]  ;;  %v1101_v39 = vld [vmem:[%s1720_s0 + $0x28] sm:$0xff]  ;;  %s1446_s28 = smov [#allocation12]  }
  0xa4   : > { %1135 = vmatmul.mubr.msk.f32.vlgmr.msra.gmra.mxu0 %vm421_vm0, %v1088_v3  ;;  %s418_s20 = sadd.f32 %s417_s26, %s417_s26  ;;  %v579_v23 = vstv %s417_s26  ;;  %v1100_v45 = vld [vmem:[%s1720_s0 + $0x20] sm:$0xff]  ;;  %p1361_p9 = pnand %p1360_p1, %p1882_p5 }
  0xa5   : > { %1143 = vmatpush3.msra.mxu0 %v416_v0  ;;  %1144 = vmatprep.mubr.msk.f32.mxu0 %vm1445_vm1, %v1444_v2  ;;  %v584_v21 = vstv %s419_s11  ;;  %s1363_s0 = sshll.u32 %s1446_s28, 4  ;;  %s1364_s0 = int_to_ptr.vmem [resolvable:$false] %s1363_s0 }
  0xa6   : > { %v576_v19 = vstv %s418_s20  ;;  %v586_v26 = vmul.f32 %v584_v21, %v583_v20  ;;  %v585_v31 = vmul.f32 %v584_v21, %v582_v24  ;;  %v750_v37 = vmul.f32 %v1093_v28, %v584_v21  ;;  %p1362_p10 = pneg %p1361_p9  ;;  %s1365_s8 = scalar_lea.vmem %s1364_s0, 3072 }
  0xa7   : > { %v749_v43 = vmul.f32 %v1092_v33, %v584_v21  ;;  %v914_v49 = vmul.f32 %v1101_v39, %v584_v21  ;;  %v913_v54 = vmul.f32 %v1100_v45, %v584_v21  ;;  %p1366_p13 = scmp.lt.s32.totalorder %s1784_s19, %s1364_s0  ;;  %p1367_p6 = scmp.lt.s32.totalorder %s1365_s8, %s1359_s23 }
  0xa8   : > { %1145 = vmatmul.mubr.msk.f32.vlgmr.msra.gmra.mxu0 %vm421_vm0, %v1096_v4 }
  0xa9   : > { %p1368_p12 = por %p1367_p6, %p1366_p13 }
  0xab   : > { %p1369_p2 = pnand %p1368_p12, %p1362_p10 }
 0x160   : > { %v491_v6 = vpop.f32.mrf.mxu0 }
 0x161   : > { %1127 = vmatprep.subr.mxu1 %v491_v6 }
 0x162   : > { %v1126_v8 = vpop.f32.mrf.mxu0  ;;  %1128 = vmatpush3.msra.mxu1 %v491_v6 }
 0x163   : > { %1130 = vmatmul.mubr.msk.f32.vlgmr.msra.gmra.mxu1 %vm421_vm0, %v415_v7 }
 0x164   : > { %v663_v9 = vpop.f32.mrf.mxu0  ;;  %1139 = vmatprep.mubr.msk.f32.mxu1 %vm421_vm0, %v414_v5 }
 0x165   : > { %1137 = vmatprep.subr.mxu1 %v663_v9 }
 0x166   : > { %v1136_v10 = vpop.f32.mrf.mxu0  ;;  %1138 = vmatpush3.msra.mxu1 %v663_v9 }
 0x167   : > { %1140 = vmatmul.mubr.msk.f32.vlgmr.msra.gmra.mxu1 %vm421_vm0, %v415_v7 }
 0x168   : > { %v827_v11 = vpop.f32.mrf.mxu0  ;;  %1149 = vmatprep.mubr.msk.f32.mxu1 %vm421_vm0, %v414_v5 }
 0x169   : > { %1147 = vmatprep.subr.mxu1 %v827_v11 }
 0x16a   : > { %v1146_v12 = vpop.f32.mrf.mxu0  ;;  %1148 = vmatpush3.msra.mxu1 %v827_v11 }
 0x16b   : > { %1150 = vmatmul.mubr.msk.f32.vlgmr.msra.gmra.mxu1 %vm421_vm0, %v415_v7 }
 0x223   : > { %v1131_v22 = vpop.f32.mrf.mxu1 }
 0x224   : > { %v578_v25 = vmul.f32 %v1131_v22, %v576_v19 }
 0x225   : > { %v567_v27 = vpop.f32.mrf.mxu1 }
 0x226   : > { %v581_v29 = vsub.f32 %v578_v25, %v579_v23  ;;  %v577_v30 = vmul.f32 %v576_v19, %v567_v27 }
 0x227   : > { %v1141_v32 = vpop.f32.mrf.mxu1 }
 0x228   : > { %v588_v34 = vadd.f32 %v586_v26, %v581_v29  ;;  %v580_v35 = vsub.f32 %v577_v30, %v579_v23  ;;  %v743_v36 = vmul.f32 %v1141_v32, %v576_v19 }
 0x229   : > { %v733_v38 = vpop.f32.mrf.mxu1 }
 0x22a   : > { %1087 = vst.msk [vmem:[%s1747_s3 + $0x38] sm:$0xff] %vm407_vm2, %v588_v34  ;;  %v587_v40 = vadd.f32 %v585_v31, %v580_v35  ;;  %v745_v41 = vsub.f32 %v743_v36, %v579_v23  ;;  %v742_v42 = vmul.f32 %v733_v38, %v576_v19 }
 0x22b   : > { %v1151_v44 = vpop.f32.mrf.mxu1 }
 0x22c   : > { %1086 = vst.msk [vmem:[%s1747_s3 + $0x30] sm:$0xff] %vm407_vm2, %v587_v40  ;;  %v752_v46 = vadd.f32 %v750_v37, %v745_v41  ;;  %v744_v47 = vsub.f32 %v742_v42, %v579_v23  ;;  %v907_v48 = vmul.f32 %v1151_v44, %v576_v19 }
 0x22d   : > { %v897_v50 = vpop.f32.mrf.mxu1 }
 0x22e   : > { %1095 = vst.msk [vmem:[%s1747_s3 + $0x48] sm:$0xff] %vm407_vm2, %v752_v46  ;;  %v751_v51 = vadd.f32 %v749_v43, %v744_v47  ;;  %v909_v52 = vsub.f32 %v907_v48, %v579_v23  ;;  %v906_v53 = vmul.f32 %v897_v50, %v576_v19 }
 0x230   : > { %1094 = vst.msk [vmem:[%s1747_s3 + $0x40] sm:$0xff] %vm407_vm2, %v751_v51  ;;  %v916_v55 = vadd.f32 %v914_v49, %v909_v52  ;;  %v908_v56 = vsub.f32 %v906_v53, %v579_v23 }
 0x232   : > { %1103 = vst.msk [vmem:[%s1747_s3 + $0x58] sm:$0xff] %vm407_vm2, %v916_v55  ;;  %v915_v57 = vadd.f32 %v913_v54, %v908_v56 }
 0x234   : > { %1102 = vst.msk [vmem:[%s1747_s3 + $0x50] sm:$0xff] %vm407_vm2, %v915_v57 }
 0x235   : > { %1372 = shalt.err (!%p1369_p2)
}
 0x236   : > { %s1373_s12 = scalar_lea.hbm %s1782_s15, 1536  ;;  %s1377_s9 = scalar_lea.hbm %s1838_s7, 3072 }
 0x237   : > { %p1374_p8 = scmp.ne.s32.totalorder %s1782_s15, %s1373_s12  ;;  %p1378_p0 = scmp.lt.s32.totalorder %s1782_s15, %s1838_s7 }
 0x238   : > { %p1379_p11 = scmp.lt.s32.totalorder %s1377_s9, %s1373_s12 }
 0x239   : > { %p1375_p4 = pnand %p1374_p8, %p1882_p5 }
 0x23a   : > { %p1380_p3 = por %p1379_p11, %p1378_p0 }
 0x23b   : > { %p1376_p7 = pneg %p1375_p4 }
 0x23d   : > { %p1381_p1 = pnand %p1380_p3, %p1376_p7 }
 0x23f   : > { %1384 = shalt.err (!%p1381_p1)
}
 0x240   : > { %s1447_s3 = smov 128   ;;  %s1448_s26 = smov 8  }
 0x241   : > { %1176 = dma.vmem_to_hbm [thread:$0]  (%p1882_p5), %s1784_s19, 1536, %s1782_s15, %s921_s22, %s1447_s3, %s1447_s3, %s1448_s26  }
 0x242 PF: > { %s949_s11 = sand.u32 1, %s1423_s24   ;;  %p1883_p9 = scmp.ne.s32.totalorder %s1867_s18, 0 }
 0x243   : > { %p1884_p10 = scmp.ge.s32.totalorder %s1435_s27, 2  ;;  %s950_s20 = scalar_lea.sflag [#allocation4], %s949_s11 }
 0x245   : > { %p1196_p13 = pnand %p1884_p10, %p1883_p9 }
 0x247   : > { %p1197_p6 = pneg %p1196_p13 }
 0x249   : > { %1418 = dma.done.wait (%p1197_p6), %s950_s20, 1536  }
 0x24a   : > { %1420 = vsyncadd (%p1197_p6), %s950_s20, 4294965760  ;;  %s1885_s27 = sld [smem:[#allocation19_spill]]  ;;  %s1888_s24 = smov %s1427_s25 }
 0x24b   : > { %s1886_s1 = sld [smem:[#allocation18_spill]] }
 0x24c   : > { %s1887_s26 = sld [smem:[#allocation20_spill]] }
 0x250   : > { %p25_p12 = scmp.ge.s32.totalorder %s1885_s27, 4  }
 0x251   : > { %s1889_s25 = smov %s1886_s1 }
 0x252   :  { %27 = sbr.rel (!%p25_p12) target bundleno = 13 (0xd), region = 133 }
 0x257   :  { %955 = vsyncpa [#allocation3], 1 }
 0x258   :  { %957 = vsyncpa [#allocation3 + $0x1], 1 }
 0x259   :  { %958 = vsyncpa [#allocation10], 1 }
 0x25a   :  { %960 = vsyncpa [#allocation10 + $0x1], 1 }
 0x25b   :  { %961 = vsyncpa [#allocation4], 1 }
 0x25c   :  { %963 = vsyncpa [#allocation4 + $0x1], 1 }
 0x25d   :  { %964 = vsyncpa [#allocation5], 1 }
 0x25e   :  { %966 = vsyncpa [#allocation5 + $0x1], 1 }
 0x25f   :  { %967 = vsyncpa [#allocation7], 1 }

</bundles_post_ra>
